<compile_context>
chip_gen: v7x
topology: tpu7x:2x2x1
jax: 0.10.0
libtpu: 0.0.40
codegen_flags: <defaults>
</compile_context>

<pallas_src>
import jax
import jax.numpy as jnp
from jax.experimental import pallas as pl
from jax.experimental.pallas import tpu as pltpu

EPS = 1e-5  # epsilon used by UnitGaussianNormalizer.decode()
_LANE = 128
_SUBLANE = 8


def _denorm_kernel(x_ref, stats_ref, o_ref):
    # x_ref:     (N, rb, 128) tile of the input
    # stats_ref: (2, rb, 128) tile; [0] = std, [1] = mean
    std = stats_ref[0]
    mean = stats_ref[1]
    o_ref[...] = (x_ref[...] * (std + EPS) + mean).astype(o_ref.dtype)


def _round_up(x, m):
    return ((x + m - 1) // m) * m


def _choose_rows_per_block(n_batch, n_rows_raw, dtype_bytes,
                           target_block_bytes=2 << 20):
    """Pick the (sublane-aligned) feature-row tile size."""
    bytes_per_row = max(1, n_batch * _LANE * dtype_bytes)  # one (·,128) row of x
    rb = (target_block_bytes // bytes_per_row) // _SUBLANE * _SUBLANE
    rb = max(_SUBLANE, rb)
    # Keep at least 2 grid steps when there is enough work (v7x has 2 TCs).
    if n_rows_raw >= 2 * _SUBLANE:
        rb = min(rb, max(_SUBLANE, (n_rows_raw // 2) // _SUBLANE * _SUBLANE))
    # Never bigger than the (padded) number of rows.
    rb = min(rb, max(_SUBLANE, _round_up(n_rows_raw, _SUBLANE)))
    return rb


def output_denormalize(x, mean, std):
    """decode(x) = x * (std + EPS) + mean via a Pallas TPU kernel.

    x:    (N, *feat) float array
    mean: (*feat)    array (same feature shape as x[0])
    std:  (*feat)    array
    """
    N = x.shape[0]
    F = 1
    for d in x.shape[1:]:
        F *= d
    dtype = x.dtype
    dtype_bytes = jnp.dtype(dtype).itemsize

    x2 = x.reshape(N, F)
    # Single combined stats operand: row 0 = std, row 1 = mean (one DMA/step).
    stats2 = jnp.stack([std.reshape(F), mean.reshape(F)], axis=0)

    # Fold features into (rows, 128): lane-dense, sublane-dense blocks.
    n_rows_raw = pl.cdiv(F, _LANE)
    rb = _choose_rows_per_block(N, n_rows_raw, dtype_bytes)
    n_rows = _round_up(n_rows_raw, rb)
    Fp = n_rows * _LANE
    if Fp != F:
        # Padded region computes 0*(0+eps)+0 = 0 and is sliced off afterwards.
        x2 = jnp.pad(x2, ((0, 0), (0, Fp - F)))
        stats2 = jnp.pad(stats2, ((0, 0), (0, Fp - F)))

    x3 = x2.reshape(N, n_rows, _LANE)
    stats3 = stats2.reshape(2, n_rows, _LANE)

    grid = (n_rows // rb,)

    blk_x_bytes = N * rb * _LANE * dtype_bytes
    blk_s_bytes = 2 * rb * _LANE * jnp.dtype(stats3.dtype).itemsize
    # Double-buffered in/out/stats working set + headroom; capped at the v7x
    # 64 MiB physical VMEM, floored at 32 MiB (safe on all generations).
    vmem_limit = int(min(64 << 20,
                         max(32 << 20,
                             2 * (2 * blk_x_bytes + blk_s_bytes) + (4 << 20))))

    out3 = pl.pallas_call(
        _denorm_kernel,
        out_shape=jax.ShapeDtypeStruct((N, n_rows, _LANE), dtype),
        grid_spec=pltpu.PrefetchScalarGridSpec(
            num_scalar_prefetch=0,
            grid=grid,
            in_specs=[
                pl.BlockSpec((N, rb, _LANE), lambda j: (0, j, 0)),
                pl.BlockSpec((2, rb, _LANE), lambda j: (0, j, 0)),
            ],
            out_specs=pl.BlockSpec((N, rb, _LANE), lambda j: (0, j, 0)),
        ),
        compiler_params=pltpu.CompilerParams(
            dimension_semantics=("parallel",),
            vmem_limit_bytes=vmem_limit,
        ),
    )(x3, stats3)

    out2 = out3.reshape(N, Fp)
    if Fp != F:
        out2 = out2[:, :F]
    return out2.reshape(x.shape)


if __name__ == "__main__":
    key = jax.random.PRNGKey(0)
    k_x, k_mean, k_std = jax.random.split(key, 3)

    # Small NCHW shapes consistent with a neural-operator output.
    N, C, H, W = 2, 4, 16, 16

    x = jax.random.normal(k_x, (N, C, H, W), dtype=jnp.float32)
    # Deterministic synthetic normalizer statistics (shape = x.shape[1:]).
    mean = jax.random.normal(k_mean, (C, H, W), dtype=jnp.float32)
    std = jnp.abs(jax.random.normal(k_std, (C, H, W), dtype=jnp.float32)) + 0.5

    out = output_denormalize(x, mean, std)
    out = jax.block_until_ready(out)

    # Reference check against plain-JAX decode.
    # TODO(synk): if the reference normalizer omits eps in decode(), drop EPS here.
    ref = x * (std[None] + EPS) + mean[None]
    assert out.shape == (N, C, H, W)
    assert jnp.allclose(out, ref, atol=1e-6, rtol=1e-6)

    print("KERNEL_OK")
</pallas_src>

<mosaic_0001>
module attributes {stable_mosaic.version = 11 : i64} {
  func.func @_denorm_kernel(%arg0: i32, %arg1: memref<2x8x128xf32, #tpu.memory_space<vmem>>, %arg2: memref<2x8x128xf32, #tpu.memory_space<vmem>>, %arg3: memref<2x8x128xf32, #tpu.memory_space<vmem>>) attributes {dimension_semantics = [#tpu.dimension_semantics<parallel>], iteration_bounds = array<i64: 1>, scalar_prefetch = 0 : i64, scratch_operands = 0 : i64, tpu.core_type = #tpu.core_type<tc>, window_params = [{transform_indices = @transform_0, window_bounds = array<i64: 2, 8, 128>}, {transform_indices = @transform_1, window_bounds = array<i64: 2, 8, 128>}, {transform_indices = @transform_2, window_bounds = array<i64: 2, 8, 128>}]} {
    %c0 = arith.constant 0 : index
    %c0_0 = arith.constant 0 : index
    %c0_1 = arith.constant 0 : index
    %0 = vector.load %arg2[%c0, %c0_0, %c0_1] : memref<2x8x128xf32, #tpu.memory_space<vmem>>, vector<1x8x128xf32>
    %1 = vector.shape_cast %0 : vector<1x8x128xf32> to vector<8x128xf32>
    %c1 = arith.constant 1 : index
    %c0_2 = arith.constant 0 : index
    %c0_3 = arith.constant 0 : index
    %2 = vector.load %arg2[%c1, %c0_2, %c0_3] : memref<2x8x128xf32, #tpu.memory_space<vmem>>, vector<1x8x128xf32>
    %3 = vector.shape_cast %2 : vector<1x8x128xf32> to vector<8x128xf32>
    %c0_4 = arith.constant 0 : index
    %c0_5 = arith.constant 0 : index
    %c0_6 = arith.constant 0 : index
    %4 = vector.load %arg1[%c0_4, %c0_5, %c0_6] : memref<2x8x128xf32, #tpu.memory_space<vmem>>, vector<2x8x128xf32>
    %cst = arith.constant 9.99999974E-6 : f32
    %5 = vector.broadcast %cst : f32 to vector<8x128xf32>
    %6 = arith.addf %1, %5 : vector<8x128xf32>
    %7 = vector.shape_cast %6 : vector<8x128xf32> to vector<1x8x128xf32>
    %8 = vector.broadcast %7 : vector<1x8x128xf32> to vector<2x8x128xf32>
    %9 = arith.mulf %4, %8 : vector<2x8x128xf32>
    %10 = vector.shape_cast %3 : vector<8x128xf32> to vector<1x8x128xf32>
    %11 = vector.broadcast %10 : vector<1x8x128xf32> to vector<2x8x128xf32>
    %12 = arith.addf %9, %11 : vector<2x8x128xf32>
    %c0_7 = arith.constant 0 : index
    %c0_8 = arith.constant 0 : index
    %c0_9 = arith.constant 0 : index
    %13 = vector.load %arg3[%c0_7, %c0_8, %c0_9] : memref<2x8x128xf32, #tpu.memory_space<vmem>>, vector<2x8x128xf32>
    tpu.vector_store %arg3[%c0_7, %c0_8, %c0_9], %12 {strides = array<i32>} : memref<2x8x128xf32, #tpu.memory_space<vmem>>, vector<2x8x128xf32>,
    return
  }
  func.func @transform_0(%arg0: i32) -> (i32, i32, i32) {
    %c0_i32 = arith.constant 0 : i32
    %c0_i32_0 = arith.constant 0 : i32
    %c0_i32_1 = arith.constant 0 : i32
    return %c0_i32, %arg0, %c0_i32_0 : i32, i32, i32
  }
  func.func @transform_1(%arg0: i32) -> (i32, i32, i32) {
    %c0_i32 = arith.constant 0 : i32
    %c0_i32_0 = arith.constant 0 : i32
    %c0_i32_1 = arith.constant 0 : i32
    return %c0_i32, %arg0, %c0_i32_0 : i32, i32, i32
  }
  func.func @transform_2(%arg0: i32) -> (i32, i32, i32) {
    %c0_i32 = arith.constant 0 : i32
    %c0_i32_0 = arith.constant 0 : i32
    %c0_i32_1 = arith.constant 0 : i32
    return %c0_i32, %arg0, %c0_i32_0 : i32, i32, i32
  }
}

</mosaic_0001>

<bundles_post_ra>
// kernel: tpu_custom_call.1
= control target key start
LH: loop header
LB: loop body
LE: loop exit
PB: predicated region body
PF: predicated region fallthrough
CT: control target
= control target key end

     0   :  { %7 = vsyncpa [#allocation3], 0  ;;  %s212_s0 = inlined_call_operand.hbm [shape: f32[2,8,128], index: 0, kind: input, shape index: {}]   ;;  %s213_s1 = inlined_call_operand.hbm [shape: f32[2,8,128], index: 1, kind: input, shape index: {}]   ;;  %s214_s2 = inlined_call_operand.hbm [shape: f32[2,8,128], index: 2, kind: output, shape index: {}]  }
   0x1   :  { %8 = vsyncpa [#allocation6], 0 }
   0x2   :  { %9 = vsyncpa [#allocation4], 0  ;;  %s147_s9 = smov [#allocation2]   ;;  %s75_s13 = scalar_lea.hbm %s212_s0, 256 }
   0x3   :  { %s15_s10 = sshll.u32 %s147_s9, 4  ;;  %p76_p0 = scmp.ne.s32.totalorder %s212_s0, %s75_s13  ;;  %s16_s10 = int_to_ptr.vmem [resolvable:$true] %s15_s10 }
   0x4   :  { %p79_p1 = scmp.lt.u32.totalorder %s75_s13, %s212_s0 }
   0x6   :  { %p81_p2 = pnand %p79_p1, %p76_p0 }
   0x8   :  { %84 = shalt.err (!%p81_p2)
}
   0x9   :  { %s85_s18 = scalar_lea.vmem %s16_s10, 256  ;;  %p90_p4 = scmp.lt.s32.totalorder %s16_s10, %s16_s10 }
   0xa   :  { %p86_p3 = scmp.ne.s32.totalorder %s16_s10, %s85_s18  ;;  %p91_p5 = scmp.lt.s32.totalorder %s85_s18, %s85_s18 }
   0xc   :  { %p92_p6 = por %p91_p5, %p90_p4 }
   0xe   :  { %p93_p7 = pnand %p92_p6, %p86_p3 }
  0x10   :  { %96 = shalt.err (!%p93_p7)
}
  0x11   :  { %s148_s19 = smov 128   ;;  %s149_s20 = smov 8  }
  0x12   :  { %21 = dma.hbm_to_vmem [thread:$0]  %s212_s0, 256, %s16_s10, [#allocation3], %s148_s19, %s148_s19, %s149_s20  }
  0x13   :  { %s150_s23 = smov [#allocation5]   ;;  %s97_s27 = scalar_lea.hbm %s213_s1, 256 }
  0x14   :  { %s27_s24 = sshll.u32 %s150_s23, 4  ;;  %p98_p8 = scmp.ne.s32.totalorder %s213_s1, %s97_s27  ;;  %s28_s24 = int_to_ptr.vmem [resolvable:$true] %s27_s24 }
  0x15   :  { %p101_p9 = scmp.lt.u32.totalorder %s97_s27, %s213_s1 }
  0x17   :  { %p103_p10 = pnand %p101_p9, %p98_p8 }
  0x19   :  { %106 = shalt.err (!%p103_p10)
}
  0x1a   :  { %s107_s4 = scalar_lea.vmem %s28_s24, 256  ;;  %p112_p12 = scmp.lt.s32.totalorder %s28_s24, %s28_s24 }
  0x1b   :  { %p108_p11 = scmp.ne.s32.totalorder %s28_s24, %s107_s4  ;;  %p113_p13 = scmp.lt.s32.totalorder %s107_s4, %s107_s4 }
  0x1d   :  { %p114_p0 = por %p113_p13, %p112_p12 }
  0x1f   :  { %p115_p1 = pnand %p114_p0, %p108_p11 }
  0x21   :  { %118 = shalt.err (!%p115_p1)
}
  0x22   :  { %33 = dma.hbm_to_vmem [thread:$0]  %s213_s1, 256, %s28_s24, [#allocation6], %s148_s19, %s148_s19, %s149_s20  }
  0x23   :  { %141 = dma.done.wait [#allocation3], 256  }
  0x24   :  { %142 = vsyncadd [#allocation3], 4294967040 }
  0x25   :  { %143 = dma.done.wait [#allocation6], 256  }
  0x26   :  { %144 = vsyncadd [#allocation6], 4294967040  ;;  %v40_v0 = vld [vmem:[#allocation5] sm:$0xff]  ;;  %v43_v1 = vld [vmem:[#allocation2] sm:$0xff]  ;;  %s151_s6 = smov [#allocation7]  }
  0x27   :  { %v45_v2 = vadd.f32 1e-05, %v40_v0  ;;  %v44_v3 = vld [vmem:[#allocation2 + $0x8] sm:$0xff]  ;;  %v42_v4 = vld [vmem:[#allocation5 + $0x8] sm:$0xff]  ;;  %s57_s7 = sshll.u32 %s151_s6, 4  ;;  %s58_s7 = int_to_ptr.vmem [resolvable:$true] %s57_s7 }
  0x28   :  { %s119_s8 = scalar_lea.vmem %s58_s7, 256  ;;  %p124_p3 = scmp.lt.s32.totalorder %s58_s7, %s58_s7 }
  0x29   :  { %v46_v5 = vmul.f32 %v45_v2, %v43_v1  ;;  %v47_v6 = vmul.f32 %v45_v2, %v44_v3  ;;  %p120_p2 = scmp.ne.s32.totalorder %s58_s7, %s119_s8  ;;  %p125_p4 = scmp.lt.s32.totalorder %s119_s8, %s119_s8 }
  0x2b   :  { %v48_v7 = vadd.f32 %v46_v5, %v42_v4  ;;  %v49_v8 = vadd.f32 %v47_v6, %v42_v4  ;;  %p126_p5 = por %p125_p4, %p124_p3 }
  0x2d   :  { %50 = vst [vmem:[#allocation7] sm:$0xff] %v48_v7  ;;  %51 = vst [vmem:[#allocation7 + $0x8] sm:$0xff] %v49_v8  ;;  %p127_p6 = pnand %p126_p5, %p120_p2 }
  0x2f   :  { %130 = shalt.err (!%p127_p6)
}
  0x30   :  { %s131_s10 = scalar_lea.hbm %s214_s2, 256 }
  0x31   :  { %p132_p7 = scmp.ne.s32.totalorder %s214_s2, %s131_s10  ;;  %p135_p8 = scmp.lt.u32.totalorder %s131_s10, %s214_s2 }
  0x33   :  { %p137_p9 = pnand %p135_p8, %p132_p7 }
  0x35   :  { %140 = shalt.err (!%p137_p9)
}
  0x36   :  { %63 = dma.vmem_to_hbm [thread:$0]  %s58_s7, 256, %s214_s2, [#allocation4], %s148_s19, %s148_s19, %s149_s20  }
  0x37   :  { %145 = dma.done.wait [#allocation4], 256  }
  0x38   :  { %146 = vsyncadd [#allocation4], 4294967040 }
  0x39   :  { %67 = vsyncpa [#allocation3], 1 }
  0x3a   :  { %68 = vsyncpa [#allocation6], 1 }
  0x3b   :  { %69 = vsyncpa [#allocation4], 1 }

</bundles_post_ra>
